<compile_context>
chip_gen: v7x
topology: tpu7x:2x2x1
jax: 0.10.0
libtpu: 0.0.40
codegen_flags: <defaults>
</compile_context>

<pallas_src>
import functools

import jax
import jax.numpy as jnp
from jax.experimental import pallas as pl
from jax.experimental.pallas import tpu as pltpu

BN_EPS = 1e-5
_LANE = 128
_SUBLANE = 8


def _round_up(v, m):
    return -(-v // m) * m


def _vmem_limit_bytes():
    """Generation-aware VMEM scope: ~64 MiB on v5e/v6e, ~48 MiB on v7x."""
    try:
        cap = pltpu.get_tpu_info().vmem_capacity_bytes
    except Exception:
        cap = None
    if not cap:
        cap = 64 * 1024 * 1024                      # conservative fallback (v7x per-TC)
    if cap >= 128 * 1024 * 1024:                    # v5e / v6e (128 MiB physical)
        return 64 * 1024 * 1024
    return min(cap * 3 // 4, 48 * 1024 * 1024)      # v7x (64 MiB per TC)


def _choose_tn(n, c, hw, itemsize, budget_bytes):
    """Largest batch tile whose padded VMEM footprint fits the per-tile budget."""
    sub = _SUBLANE if itemsize >= 4 else _SUBLANE * (4 // itemsize)  # bf16 packs 16 rows
    if hw > 1:   # x tile is (tn, C, HW): C on sublanes, HW on lanes
        row = _round_up(c, sub) * _round_up(hw, _LANE) * itemsize
    else:        # x tile is (tn, C): C on lanes
        row = _round_up(c, _LANE) * itemsize
    row += _round_up(c, _LANE) * 4 + _LANE * 4       # f32 pooled row + z row temps
    rows = max(1, budget_bytes // row)
    if rows >= n:
        return n
    return max(_SUBLANE, (rows // _SUBLANE) * _SUBLANE)


def _pool_linear(x_ref, w_ref):
    """adaptive_avg_pool2d (sum; 1/HW folded into w) + Linear, f32 accumulation."""
    if len(x_ref.shape) == 3:                                        # (tn, C, HW)
        # Lane-axis reduce with f32 accumulation -> no materialized f32 tile copy.
        pooled = jnp.sum(x_ref[...], axis=-1, dtype=jnp.float32)     # (tn, C)
    else:                                                            # (tn, C) already pooled
        pooled = x_ref[...].astype(jnp.float32)
    return jnp.dot(pooled, w_ref[...], preferred_element_type=jnp.float32)


def _fused_kernel(x_ref, w_ref, g_ref, b_ref, o_ref, z_acc, *, n_valid, tn):
    """Streamed pool+linear over the batch; full-batch BN at the last grid step."""
    i = pl.program_id(0)
    z = _pool_linear(x_ref, w_ref)                                   # (tn, Dp)
    z_acc[pl.ds(pl.multiple_of(i * tn, tn), tn), :] = z

    @pl.when(i == pl.num_programs(0) - 1)
    def _():
        # BatchNorm1d, training-mode batch statistics, biased variance, eps=1e-5.
        # Rows >= n_valid come from the last partial input tile: mask them out of
        # the statistics (jnp.where so garbage/NaN rows cannot leak in).
        # TODO(synk): eval-mode running_mean/running_var is not implemented.
        zf = z_acc[...]                                              # (N_pad, Dp)
        rows = jax.lax.broadcasted_iota(jnp.int32, zf.shape, 0)
        valid = rows < n_valid
        inv_n = 1.0 / float(n_valid)
        mu = jnp.sum(jnp.where(valid, zf, 0.0), axis=0, keepdims=True) * inv_n
        dev = jnp.where(valid, zf - mu, 0.0)
        var = jnp.sum(dev * dev, axis=0, keepdims=True) * inv_n
        y = (zf - mu) * jax.lax.rsqrt(var + BN_EPS)
        o_ref[...] = y * g_ref[...] + b_ref[...]


def _pool_linear_kernel(x_ref, w_ref, z_ref):
    z_ref[...] = _pool_linear(x_ref, w_ref)


def _bn_kernel(z_ref, g_ref, b_ref, o_ref, *, n_valid):
    """Full-batch BatchNorm1d on the small (N, Dp) intermediate (split path)."""
    z = z_ref[...]
    inv_n = 1.0 / float(n_valid)
    mu = jnp.sum(z, axis=0, keepdims=True) * inv_n
    var = jnp.sum((z - mu) * (z - mu), axis=0, keepdims=True) * inv_n
    o_ref[...] = (z - mu) * jax.lax.rsqrt(var + BN_EPS) * g_ref[...] + b_ref[...]


def bbox_regressor(x, w, b, gamma, beta, *, tile_n=None, split_bn=None):
    """Forward pass of BBoxRegressor (bn_neck=True, BatchNorm1d in training mode).

    x: [N, C, H, W] or [N, C]; w: [in_channels, 4*num_classes].  The Linear bias
    `b` is accepted for API fidelity but cancels exactly under the BN mean
    subtraction.  Returns [N, 4*num_classes] float32.
    """
    if x.ndim == 4:
        n, c, h, wd = x.shape
        hw = h * wd
    elif x.ndim == 2:
        n, c = x.shape
        hw = 1
    else:
        raise ValueError(f"unsupported ndim {x.ndim}")
    del b  # cancelled by the BN mean subtraction (dead work otherwise)

    # Free reshape only (NCHW stays channel-major; HW lands on the lane axis).
    x3 = x.reshape(n, c, hw) if hw > 1 else x.reshape(n, c)

    d = w.shape[-1]
    dp = _round_up(d, _LANE)                        # lane-dense output (D=8 -> 128)

    # Fold the 1/HW avg-pool factor into the weights; zero-pad D -> Dp.  Padded
    # lanes stay harmless (gamma/beta are zero there) and are sliced off below.
    w_p = jnp.zeros((c, dp), jnp.float32).at[:, :d].set(
        w.astype(jnp.float32) / float(hw))
    g_p = jnp.zeros((1, dp), jnp.float32).at[:, :d].set(
        gamma.astype(jnp.float32).reshape(1, d))
    be_p = jnp.zeros((1, dp), jnp.float32).at[:, :d].set(
        beta.astype(jnp.float32).reshape(1, d))

    limit = _vmem_limit_bytes()
    itemsize = x3.dtype.itemsize

    # Fused path keeps the whole (N_pad, Dp) z resident in VMEM; fall back to a
    # two-kernel path when that would eat too much of the VMEM scope.
    z_resident = 3 * _round_up(n, _SUBLANE) * dp * 4      # z scratch + out block slack
    if split_bn is None:
        split_bn = z_resident > limit // 4

    w_bytes = 2 * _round_up(c, _SUBLANE) * dp * 4
    resident = w_bytes + (0 if split_bn else z_resident) + (1 << 20)
    x_budget = max(1 << 20, min((limit - resident) // 2, limit // 3))

    if tile_n is not None:
        tn = n if tile_n >= n else min(n, max(_SUBLANE, _round_up(tile_n, _SUBLANE)))
    else:
        tn = _choose_tn(n, c, hw, itemsize, x_budget)
    grid_n = pl.cdiv(n, tn)
    n_pad = grid_n * tn

    if hw > 1:
        x_spec = pl.BlockSpec((tn, c, hw), lambda i: (i, 0, 0))
    else:
        x_spec = pl.BlockSpec((tn, c), lambda i: (i, 0))
    w_spec = pl.BlockSpec((c, dp), lambda i: (0, 0))
    vec_spec = pl.BlockSpec((1, dp), lambda i: (0, 0))

    pool_flops = int(2 * n * c * dp + n * hw * c)
    x_bytes = int(n * hw * c * itemsize)             # no transpose -> estimate is exact

    if not split_bn:
        y_pad = pl.pallas_call(
            functools.partial(_fused_kernel, n_valid=n, tn=tn),
            out_shape=jax.ShapeDtypeStruct((n_pad, dp), jnp.float32),
            grid=(grid_n,),
            in_specs=[x_spec, w_spec, vec_spec, vec_spec],
            out_specs=pl.BlockSpec((n_pad, dp), lambda i: (0, 0)),
            scratch_shapes=[pltpu.VMEM((n_pad, dp), jnp.float32)],
            compiler_params=pltpu.CompilerParams(
                dimension_semantics=("arbitrary",),   # last step needs all z tiles
                vmem_limit_bytes=limit),
            cost_estimate=pl.CostEstimate(
                flops=pool_flops + int(8 * n * dp),
                transcendentals=int(dp),
                bytes_accessed=x_bytes + int((c + n_pad + 2) * dp * 4)),
        )(x3, w_p, g_p, be_p)
        return y_pad[:n, :d]

    # ---- large-N split path: streaming pool+linear ("parallel" for megacore) ----
    z = pl.pallas_call(
        _pool_linear_kernel,
        out_shape=jax.ShapeDtypeStruct((n, dp), jnp.float32),
        grid=(grid_n,),
        in_specs=[x_spec, w_spec],
        out_specs=pl.BlockSpec((tn, dp), lambda i: (i, 0)),
        compiler_params=pltpu.CompilerParams(
            dimension_semantics=("parallel",),
            vmem_limit_bytes=limit),
        cost_estimate=pl.CostEstimate(
            flops=pool_flops, transcendentals=0,
            bytes_accessed=x_bytes + int((c + n) * dp * 4)),
    )(x3, w_p)

    # TODO(synk): for N large enough that 2*N*Dp*4 exceeds the VMEM scope this BN
    # pass needs a tiled two-pass (stats + normalize) implementation.
    y = pl.pallas_call(
        functools.partial(_bn_kernel, n_valid=n),
        out_shape=jax.ShapeDtypeStruct((n, dp), jnp.float32),
        in_specs=[pl.BlockSpec(memory_space=pltpu.MemorySpace.VMEM)] * 3,
        out_specs=pl.BlockSpec(memory_space=pltpu.MemorySpace.VMEM),
        compiler_params=pltpu.CompilerParams(vmem_limit_bytes=limit),
    )(z, g_p, be_p)
    return y[:, :d]


def init_params(key, in_channels, num_classes=2):
    d = 4 * num_classes
    k_w, k_g = jax.random.split(key)
    # init.normal_(linear.weight, std=0.01); init.constant_(linear.bias, 0)
    w = 0.01 * jax.random.normal(k_w, (in_channels, d), dtype=jnp.float32)
    b = jnp.zeros((1, d), dtype=jnp.float32)
    # init.normal_(bn.weight, std=0.01); init.constant_(bn.bias, 0)
    gamma = 0.01 * jax.random.normal(k_g, (1, d), dtype=jnp.float32)
    beta = jnp.zeros((1, d), dtype=jnp.float32)
    return w, b, gamma, beta


def _reference(x, w, b, gamma, beta):
    n, c = x.shape[0], x.shape[1]
    pooled = jnp.mean(x.reshape(n, c, -1), axis=-1)
    z = pooled @ w + b
    mu = jnp.mean(z, axis=0, keepdims=True)
    var = jnp.mean((z - mu) ** 2, axis=0, keepdims=True)
    return (z - mu) * jax.lax.rsqrt(var + BN_EPS) * gamma + beta


if __name__ == "__main__":
    key = jax.random.PRNGKey(0)
    k_x, k_p = jax.random.split(key)

    N, C, H, W = 4, 32, 16, 16          # in_channels = 32, num_classes = 2 -> D = 8
    x = jax.random.normal(k_x, (N, C, H, W), dtype=jnp.float32)
    w, b, gamma, beta = init_params(k_p, in_channels=C, num_classes=2)

    out = bbox_regressor(x, w, b, gamma, beta)
    jax.block_until_ready(out)
    assert out.shape == (N, 8), out.shape
    ref = _reference(x, w, b, gamma, beta)
    assert bool(jnp.all(jnp.isfinite(out)))
    assert bool(jnp.allclose(out, ref, atol=1e-3, rtol=1e-2)), (out, ref)

    # Multi-tile fused path with a ragged batch (exercises masked BN statistics
    # and the partial last input/output tile).
    N2 = 20
    x2 = jax.random.normal(jax.random.PRNGKey(1), (N2, C, H, W), dtype=jnp.float32)
    out2 = bbox_regressor(x2, w, b, gamma, beta, tile_n=8)
    jax.block_until_ready(out2)
    ref2 = _reference(x2, w, b, gamma, beta)
    assert out2.shape == (N2, 8)
    assert bool(jnp.allclose(out2, ref2, atol=1e-3, rtol=1e-2)), (out2, ref2)

    # Large-N split path (streaming pool+linear kernel + separate BN kernel).
    out3 = bbox_regressor(x2, w, b, gamma, beta, tile_n=8, split_bn=True)
    jax.block_until_ready(out3)
    assert bool(jnp.allclose(out3, ref2, atol=1e-3, rtol=1e-2)), (out3, ref2)

    print("KERNEL_OK")
</pallas_src>

<mosaic_0001>
module attributes {stable_mosaic.version = 11 : i64} {
  func.func @_fused_kernel(%arg0: i32, %arg1: memref<4x32x256xf32, #tpu.memory_space<vmem>>, %arg2: memref<32x128xf32, #tpu.memory_space<vmem>>, %arg3: memref<1x128xf32, #tpu.memory_space<vmem>>, %arg4: memref<1x128xf32, #tpu.memory_space<vmem>>, %arg5: memref<4x128xf32, #tpu.memory_space<vmem>>, %arg6: memref<4x128xf32, #tpu.memory_space<vmem>>) attributes {dimension_semantics = [#tpu.dimension_semantics<arbitrary>], iteration_bounds = array<i64: 1>, scalar_prefetch = 0 : i64, scratch_operands = 1 : i64, tpu.core_type = #tpu.core_type<tc>, window_params = [{transform_indices = @transform_0, window_bounds = array<i64: 4, 32, 256>}, {pipeline_mode = #tpu.pipeline_mode<synchronous>, transform_indices = @transform_1, window_bounds = array<i64: 32, 128>}, {pipeline_mode = #tpu.pipeline_mode<synchronous>, transform_indices = @transform_2, window_bounds = array<i64: 1, 128>}, {pipeline_mode = #tpu.pipeline_mode<synchronous>, transform_indices = @transform_3, window_bounds = array<i64: 1, 128>}, {pipeline_mode = #tpu.pipeline_mode<synchronous>, transform_indices = @transform_4, window_bounds = array<i64: 4, 128>}]} {
    %c0 = arith.constant 0 : index
    %c0_0 = arith.constant 0 : index
    %c0_1 = arith.constant 0 : index
    %0 = vector.load %arg1[%c0, %c0_0, %c0_1] : memref<4x32x256xf32, #tpu.memory_space<vmem>>, vector<4x32x256xf32>
    %cst = arith.constant dense<0.000000e+00> : vector<4x32xf32>
    %1 = vector.multi_reduction <add>, %0, %cst [2] : vector<4x32x256xf32> to vector<4x32xf32>
    %c0_2 = arith.constant 0 : index
    %c0_3 = arith.constant 0 : index
    %2 = vector.load %arg2[%c0_2, %c0_3] : memref<32x128xf32, #tpu.memory_space<vmem>>, vector<32x128xf32>
    %cst_4 = arith.constant dense<0.000000e+00> : vector<4x128xf32>
    %3 = tpu.matmul %1, %2, %cst_4 {dimension_numbers = #tpu.dot_dimension_numbers<[1], [0], [0], [1], [0, 0, 1, 1], [], []>} : vector<4x32xf32>, vector<32x128xf32>, vector<4x128xf32> -> vector<4x128xf32>
    %c4_i32 = arith.constant 4 : i32
    %4 = arith.muli %arg0, %c4_i32 : i32
    %5 = tpu.assume_multiple %4, 4 : i32
    %6 = arith.index_cast %5 : i32 to index
    %c0_5 = arith.constant 0 : index
    %7 = vector.load %arg6[%6, %c0_5] : memref<4x128xf32, #tpu.memory_space<vmem>>, vector<4x128xf32>
    tpu.vector_store %arg6[%6, %c0_5], %3 {strides = array<i32>} : memref<4x128xf32, #tpu.memory_space<vmem>>, vector<4x128xf32>,
    %c0_i32 = arith.constant 0 : i32
    %8 = arith.cmpi eq, %arg0, %c0_i32 : i32
    %9 = arith.extui %8 : i1 to i32
    %c0_i32_6 = arith.constant 0 : i32
    %10 = arith.cmpi ne, %9, %c0_i32_6 : i32
    scf.if %10 {
      %c0_7 = arith.constant 0 : index
      %c0_8 = arith.constant 0 : index
      %11 = vector.load %arg6[%c0_7, %c0_8] : memref<4x128xf32, #tpu.memory_space<vmem>>, vector<4x128xf32>
      %12 = tpu.iota {dimensions = array<i32: 0>} : vector<4x128xi32>
      %c4_i32_9 = arith.constant 4 : i32
      %13 = vector.broadcast %c4_i32_9 : i32 to vector<4x128xi32>
      %14 = arith.cmpi slt, %12, %13 : vector<4x128xi32>
      %cst_10 = arith.constant 0.000000e+00 : f32
      %15 = vector.broadcast %cst_10 : f32 to vector<4x128xf32>
      %16 = arith.select %14, %11, %15 : vector<4x128xi1>, vector<4x128xf32>
      %cst_11 = arith.constant dense<0.000000e+00> : vector<128xf32>
      %17 = vector.multi_reduction <add>, %16, %cst_11 [0] : vector<4x128xf32> to vector<128xf32>
      %18 = vector.shape_cast %17 : vector<128xf32> to vector<1x128xf32>
      %cst_12 = arith.constant 2.500000e-01 : f32
      %19 = vector.broadcast %cst_12 : f32 to vector<1x128xf32>
      %20 = arith.mulf %18, %19 : vector<1x128xf32>
      %21 = vector.broadcast %20 : vector<1x128xf32> to vector<4x128xf32>
      %22 = arith.subf %11, %21 : vector<4x128xf32>
      %cst_13 = arith.constant 0.000000e+00 : f32
      %23 = vector.broadcast %cst_13 : f32 to vector<4x128xf32>
      %24 = arith.select %14, %22, %23 : vector<4x128xi1>, vector<4x128xf32>
      %25 = arith.mulf %24, %24 : vector<4x128xf32>
      %cst_14 = arith.constant dense<0.000000e+00> : vector<128xf32>
      %26 = vector.multi_reduction <add>, %25, %cst_14 [0] : vector<4x128xf32> to vector<128xf32>
      %27 = vector.shape_cast %26 : vector<128xf32> to vector<1x128xf32>
      %cst_15 = arith.constant 2.500000e-01 : f32
      %28 = vector.broadcast %cst_15 : f32 to vector<1x128xf32>
      %29 = arith.mulf %27, %28 : vector<1x128xf32>
      %30 = vector.broadcast %20 : vector<1x128xf32> to vector<4x128xf32>
      %31 = arith.subf %11, %30 : vector<4x128xf32>
      %cst_16 = arith.constant 9.99999974E-6 : f32
      %32 = vector.broadcast %cst_16 : f32 to vector<1x128xf32>
      %33 = arith.addf %29, %32 : vector<1x128xf32>
      %34 = math.rsqrt %33 : vector<1x128xf32>
      %35 = vector.broadcast %34 : vector<1x128xf32> to vector<4x128xf32>
      %36 = arith.mulf %31, %35 : vector<4x128xf32>
      %c0_17 = arith.constant 0 : index
      %c0_18 = arith.constant 0 : index
      %37 = vector.load %arg3[%c0_17, %c0_18] : memref<1x128xf32, #tpu.memory_space<vmem>>, vector<1x128xf32>
      %38 = vector.broadcast %37 : vector<1x128xf32> to vector<4x128xf32>
      %39 = arith.mulf %36, %38 : vector<4x128xf32>
      %c0_19 = arith.constant 0 : index
      %c0_20 = arith.constant 0 : index
      %40 = vector.load %arg4[%c0_19, %c0_20] : memref<1x128xf32, #tpu.memory_space<vmem>>, vector<1x128xf32>
      %41 = vector.broadcast %40 : vector<1x128xf32> to vector<4x128xf32>
      %42 = arith.addf %39, %41 : vector<4x128xf32>
      %c0_21 = arith.constant 0 : index
      %c0_22 = arith.constant 0 : index
      %43 = vector.load %arg5[%c0_21, %c0_22] : memref<4x128xf32, #tpu.memory_space<vmem>>, vector<4x128xf32>
      tpu.vector_store %arg5[%c0_21, %c0_22], %42 {strides = array<i32>} : memref<4x128xf32, #tpu.memory_space<vmem>>, vector<4x128xf32>,
    } else {
    }
    return
  }
  func.func @transform_0(%arg0: i32) -> (i32, i32, i32) {
    %c0_i32 = arith.constant 0 : i32
    %c0_i32_0 = arith.constant 0 : i32
    %c0_i32_1 = arith.constant 0 : i32
    return %arg0, %c0_i32, %c0_i32_0 : i32, i32, i32
  }
  func.func @transform_1(%arg0: i32) -> (i32, i32) {
    %c0_i32 = arith.constant 0 : i32
    %c0_i32_0 = arith.constant 0 : i32
    %c0_i32_1 = arith.constant 0 : i32
    return %c0_i32, %c0_i32_0 : i32, i32
  }
  func.func @transform_2(%arg0: i32) -> (i32, i32) {
    %c0_i32 = arith.constant 0 : i32
    %c0_i32_0 = arith.constant 0 : i32
    %c0_i32_1 = arith.constant 0 : i32
    return %c0_i32, %c0_i32_0 : i32, i32
  }
  func.func @transform_3(%arg0: i32) -> (i32, i32) {
    %c0_i32 = arith.constant 0 : i32
    %c0_i32_0 = arith.constant 0 : i32
    %c0_i32_1 = arith.constant 0 : i32
    return %c0_i32, %c0_i32_0 : i32, i32
  }
  func.func @transform_4(%arg0: i32) -> (i32, i32) {
    %c0_i32 = arith.constant 0 : i32
    %c0_i32_0 = arith.constant 0 : i32
    %c0_i32_1 = arith.constant 0 : i32
    return %c0_i32, %c0_i32_0 : i32, i32
  }
}

</mosaic_0001>

<bundles_post_ra>
// kernel: tpu_custom_call.1
= control target key start
LH: loop header
LB: loop body
LE: loop exit
PB: predicated region body
PF: predicated region fallthrough
CT: control target
= control target key end

     0   :  { %9 = vsyncpa [#allocation4], 0  ;;  %s582_s0 = inlined_call_operand.hbm [shape: f32[4,32,256], index: 0, kind: input, shape index: {}]   ;;  %s583_s1 = inlined_call_operand.hbm [shape: f32[32,128], index: 1, kind: input, shape index: {}]   ;;  %s584_s2 = inlined_call_operand.vmem [shape: f32[1,128], index: 2, kind: input, shape index: {}]   ;;  %s585_s3 = inlined_call_operand.vmem [shape: f32[1,128], index: 3, kind: input, shape index: {}]   ;;  %s586_s4 = inlined_call_operand.hbm [shape: f32[4,128], index: 4, kind: output, shape index: {}]  }
   0x1   :  { %10 = vsyncpa [#allocation7], 0 }
   0x2   :  { %11 = vsyncpa [#allocation5], 0  ;;  %s486_s15 = smov [#allocation3]   ;;  %s414_s19 = scalar_lea.hbm %s582_s0, 4096 }
   0x3   :  { %s17_s16 = sshll.u32 %s486_s15, 4  ;;  %p415_p0 = scmp.ne.s32.totalorder %s582_s0, %s414_s19  ;;  %s18_s16 = int_to_ptr.vmem [resolvable:$true] %s17_s16 }
   0x4   :  { %p418_p1 = scmp.lt.u32.totalorder %s414_s19, %s582_s0 }
   0x6   :  { %p420_p2 = pnand %p418_p1, %p415_p0 }
   0x8   :  { %423 = shalt.err (!%p420_p2)
}
   0x9   :  { %s424_s24 = scalar_lea.vmem %s18_s16, 4096  ;;  %p429_p4 = scmp.lt.s32.totalorder %s18_s16, %s18_s16 }
   0xa   :  { %p425_p3 = scmp.ne.s32.totalorder %s18_s16, %s424_s24  ;;  %p430_p5 = scmp.lt.s32.totalorder %s424_s24, %s424_s24 }
   0xc   :  { %p431_p6 = por %p430_p5, %p429_p4 }
   0xe   :  { %p432_p7 = pnand %p431_p6, %p425_p3 }
  0x10   :  { %435 = shalt.err (!%p432_p7)
}
  0x11   :  { %s487_s25 = smov 256   ;;  %s488_s26 = smov 16  }
  0x12   :  { %23 = dma.hbm_to_vmem [thread:$0]  %s582_s0, 4096, %s18_s16, [#allocation4], %s487_s25, %s487_s25, %s488_s26  }
  0x13   :  { %s489_s29 = smov [#allocation6]   ;;  %s436_s7 = scalar_lea.hbm %s583_s1, 512 }
  0x14   :  { %s29_s30 = sshll.u32 %s489_s29, 4  ;;  %p437_p8 = scmp.ne.s32.totalorder %s583_s1, %s436_s7  ;;  %s30_s30 = int_to_ptr.vmem [resolvable:$true] %s29_s30 }
  0x15   :  { %p440_p9 = scmp.lt.u32.totalorder %s436_s7, %s583_s1 }
  0x17   :  { %p442_p10 = pnand %p440_p9, %p437_p8 }
  0x19   :  { %445 = shalt.err (!%p442_p10)
}
  0x1a   :  { %s446_s12 = scalar_lea.vmem %s30_s30, 512  ;;  %p451_p12 = scmp.lt.s32.totalorder %s30_s30, %s30_s30 }
  0x1b   :  { %p447_p11 = scmp.ne.s32.totalorder %s30_s30, %s446_s12  ;;  %p452_p13 = scmp.lt.s32.totalorder %s446_s12, %s446_s12 }
  0x1d   :  { %p453_p0 = por %p452_p13, %p451_p12 }
  0x1f   :  { %p454_p1 = pnand %p453_p0, %p447_p11 }
  0x21   :  { %457 = shalt.err (!%p454_p1)
}
  0x22   :  { %s490_s0 = smov 128   ;;  %s491_s13 = smov 8  }
  0x23   :  { %35 = dma.hbm_to_vmem [thread:$0]  %s583_s1, 512, %s30_s30, [#allocation7], %s490_s0, %s490_s0, %s491_s13  }
  0x24   :  { %480 = dma.done.wait [#allocation4], 4096  }
  0x25   :  { %481 = vsyncadd [#allocation4], 4294963200 }
  0x26   :  { %482 = dma.done.wait [#allocation7], 512  }
  0x27   :  { %483 = vsyncadd [#allocation7], 4294966784  ;;  %v54_v0 = vld [vmem:[#allocation3 + $0x40] sm:$0xff]  ;;  %v55_v1 = vld [vmem:[#allocation3 + $0x48] sm:$0xff]  ;;  %v492_v51 = vmov 0.0|0.0   ;;  %vm493_vm0 = vmmov 0   ;;  %v146_v60 = vlaneseq }
  0x28   :  { %v46_v2 = vld [vmem:[#allocation3] sm:$0xff]  ;;  %v90_v3 = vadd.f32 %v55_v1, %v54_v0  ;;  %v47_v4 = vld [vmem:[#allocation3 + $0x8] sm:$0xff]  ;;  %v56_v5 = vld [vmem:[#allocation3 + $0x50] sm:$0xff]  ;;  %396 = vmatprep.subr.bf16.mxu0 %v492_v51  ;;  %v494_v55 = vmov 0.0   ;;  %vm157_vm1 = vcmask 130112   ;;  %vm164_vm2 = vcmask 195712  }
  0x29   :  { %v57_v6 = vld [vmem:[#allocation3 + $0x58] sm:$0xff]  ;;  %v78_v7 = vadd.f32 %v47_v4, %v46_v2  ;;  %v48_v8 = vld [vmem:[#allocation3 + $0x10] sm:$0xff]  ;;  %v58_v12 = vld [vmem:[#allocation3 + $0x60] sm:$0xff]  ;;  %393 = vmatprep.mubr.msk.f32.mxu0 %vm493_vm0, %v494_v55  ;;  %v147_v63 = vand.u32 127, %v146_v60  ;;  %vm171_vm3 = vcmask 261312   ;;  %vm230_vm4 = vcmask 1041409  }
  0x2a   :  { %v49_v9 = vld [vmem:[#allocation3 + $0x18] sm:$0xff]  ;;  %91 = vadd.xlane.f32.xlu1 %v90_v3  ;;  %v93_v10 = vadd.f32 %v57_v6, %v56_v5  ;;  %v59_v13 = vld [vmem:[#allocation3 + $0x68] sm:$0xff]  ;;  %v50_v14 = vld [vmem:[#allocation3 + $0x20] sm:$0xff]  ;;  %v545_v3 = vshrl.u32 %v146_v60, 7  ;;  %vm232_vm5 = vcmask 1042434   ;;  %vm234_vm6 = vcmask 1043459  }
  0x2b   :  { %79 = vadd.xlane.f32.xlu0 %v78_v7  ;;  %v81_v11 = vadd.f32 %v49_v9, %v48_v8  ;;  %v51_v15 = vld [vmem:[#allocation3 + $0x28] sm:$0xff]  ;;  %v96_v16 = vadd.f32 %v59_v13, %v58_v12  ;;  %v64_v18 = vld [vmem:[#allocation3 + $0x90] sm:$0xff]  ;;  %v65_v19 = vld [vmem:[#allocation3 + $0x98] sm:$0xff]  ;;  %v152_v2 = vadd.s32 4294967288, %v147_v63  ;;  %v159_v4 = vadd.s32 4294967280, %v147_v63  ;;  %s495_s19 = smov [#allocation8]  }
  0x2c   :  { %v84_v17 = vadd.f32 %v51_v15, %v50_v14  ;;  %v62_v20 = vld [vmem:[#allocation3 + $0x80] sm:$0xff]  ;;  %v63_v21 = vld [vmem:[#allocation3 + $0x88] sm:$0xff]  ;;  %v105_v22 = vadd.f32 %v65_v19, %v64_v18  ;;  %v60_v24 = vld [vmem:[#allocation3 + $0x70] sm:$0xff]  ;;  %v166_v5 = vadd.s32 4294967272, %v147_v63  ;;  %v150_v9 = vsub.s32 %v147_v63, %v545_v3  ;;  %s367_s20 = sshll.u32 %s495_s19, 4  ;;  %s368_s20 = int_to_ptr.vmem [resolvable:$true] %s367_s20 }
  0x2d   :  { %v102_v23 = vadd.f32 %v63_v21, %v62_v20  ;;  %v61_v25 = vld [vmem:[#allocation3 + $0x78] sm:$0xff]  ;;  %v52_v26 = vld [vmem:[#allocation3 + $0x30] sm:$0xff]  ;;  %v70_v30 = vld [vmem:[#allocation3 + $0xc0] sm:$0xff]  ;;  %v155_v8 = vsub.s32 %v152_v2, %v545_v3  ;;  %vm236_vm7 = vcmask 261120   ;;  %vm319_vm8 = vcmp.lt.s32.totalorder %v545_v3, 4  ;;  %s458_s21 = scalar_lea.vmem %s368_s20, 64  ;;  %p463_p3 = scmp.lt.s32.totalorder %s368_s20, %s368_s20 }
  0x2e   :  { %94 = vadd.xlane.f32.xlu1 %v93_v10  ;;  %v53_v27 = vld [vmem:[#allocation3 + $0x38] sm:$0xff]  ;;  %v99_v28 = vadd.f32 %v61_v25, %v60_v24  ;;  %v71_v31 = vld [vmem:[#allocation3 + $0xc8] sm:$0xff]  ;;  %v66_v32 = vld [vmem:[#allocation3 + $0xa0] sm:$0xff]  ;;  %v162_v10 = vsub.s32 %v159_v4, %v545_v3  ;;  %vm321_vm9 = vcmask 1043456   ;;  %p459_p2 = scmp.ne.s32.totalorder %s368_s20, %s458_s21  ;;  %p464_p4 = scmp.lt.s32.totalorder %s458_s21, %s458_s21 }
  0x2f   :  { %82 = vadd.xlane.f32.xlu0 %v81_v11  ;;  %v87_v29 = vadd.f32 %v53_v27, %v52_v26  ;;  %v67_v33 = vld [vmem:[#allocation3 + $0xa8] sm:$0xff]  ;;  %v114_v34 = vadd.f32 %v71_v31, %v70_v30  ;;  %v68_v36 = vld [vmem:[#allocation3 + $0xb0] sm:$0xff]  ;;  %v69_v37 = vld [vmem:[#allocation3 + $0xb8] sm:$0xff]  ;;  %v169_v11 = vsub.s32 %v166_v5, %v545_v3 }
  0x30   :  { %v108_v35 = vadd.f32 %v67_v33, %v66_v32  ;;  %v72_v38 = vld [vmem:[#allocation3 + $0xd0] sm:$0xff]  ;;  %v73_v39 = vld [vmem:[#allocation3 + $0xd8] sm:$0xff]  ;;  %v111_v40 = vadd.f32 %v69_v37, %v68_v36  ;;  %v74_v44 = vld [vmem:[#allocation3 + $0xe0] sm:$0xff]  ;;  %p465_p5 = por %p464_p4, %p463_p3 }
  0x31   :  { %v117_v41 = vadd.f32 %v73_v39, %v72_v38  ;;  %v76_v42 = vld [vmem:[#allocation3 + $0xf0] sm:$0xff]  ;;  %v77_v43 = vld [vmem:[#allocation3 + $0xf8] sm:$0xff]  ;;  %v75_v45 = vld [vmem:[#allocation3 + $0xe8] sm:$0xff] }
  0x32   :  { %97 = vadd.xlane.f32.xlu1 %v96_v16  ;;  %v123_v46 = vadd.f32 %v77_v43, %v76_v42  ;;  %v120_v47 = vadd.f32 %v75_v45, %v74_v44  ;;  %v126_v48 = vld [vmem:[#allocation6] sm:$0xff]  ;;  %v127_v49 = vld [vmem:[#allocation6 + $0x8] sm:$0xff]  ;;  %v128_v52 = vld [vmem:[#allocation6 + $0x10] sm:$0xff]  ;;  %p466_p6 = pnand %p465_p5, %p459_p2 }
  0x33   :  { %85 = vadd.xlane.f32.xlu0 %v84_v17  ;;  %v397_v50 = vpack.c.bf16 %v127_v49, %v126_v48  ;;  %v129_v53 = vld [vmem:[#allocation6 + $0x18] sm:$0xff] }
  0x34   :  { %v400_v54 = vpack.c.bf16 %v129_v53, %v128_v52 }
  0x35   :  { %398 = vmatpush3.bf16.msra.mxu0 %v397_v50 }
  0x36   :  { %106 = vadd.xlane.f32.xlu1 %v105_v22  ;;  %399 = vmatprep.subr.bf16.mxu0 %v492_v51 }
  0x37   :  { %103 = vadd.xlane.f32.xlu0 %v102_v23 }
  0x39   :  { %401 = vmatpush3.bf16.msra.mxu0 %v400_v54 }
  0x3a   :  { %100 = vadd.xlane.f32.xlu1 %v99_v28 }
  0x3b   :  { %88 = vadd.xlane.f32.xlu0 %v87_v29 }
  0x3e   :  { %115 = vadd.xlane.f32.xlu1 %v114_v34 }
  0x3f   :  { %109 = vadd.xlane.f32.xlu0 %v108_v35 }
  0x42   :  { %112 = vadd.xlane.f32.xlu1 %v111_v40 }
  0x43   :  { %118 = vadd.xlane.f32.xlu0 %v117_v41 }
  0x46   :  { %124 = vadd.xlane.f32.xlu1 %v123_v46 }
  0x47   :  { %121 = vadd.xlane.f32.xlu0 %v120_v47 }
  0xb7   :  { %v92_v56 = vpop.xlane.xlu1 %91 }
  0xb8   :  { %v80_v57 = vpop.xlane.xlu0 %79  ;;  %v176_v15 = vrot.slane %v92_v56, %v150_v9 }
  0xb9   :  { %v151_v23 = vrot.slane %v80_v57, %v150_v9 }
  0xbb   :  { %v95_v58 = vpop.xlane.xlu1 %94 }
  0xbc   :  { %v83_v59 = vpop.xlane.xlu0 %82  ;;  %v180_v14 = vrot.slane %v95_v58, %v155_v8 }
  0xbd   :  { %v156_v16 = vrot.slane %v83_v59, %v155_v8 }
  0xbe   :  { %v181_v27 = vsel %vm157_vm1, %v180_v14, %v176_v15 }
  0xbf   :  { %v98_v61 = vpop.xlane.xlu1 %97  ;;  %v158_v29 = vsel %vm157_vm1, %v156_v16, %v151_v23 }
  0xc0   :  { %v86_v62 = vpop.xlane.xlu0 %85  ;;  %v185_v17 = vrot.slane %v98_v61, %v162_v10 }
  0xc1   :  { %v163_v18 = vrot.slane %v86_v62, %v162_v10 }
  0xc2   :  { %v186_v30 = vsel %vm164_vm2, %v185_v17, %v181_v27 }
  0xc3   :  { %v107_v0 = vpop.xlane.xlu1 %106  ;;  %v165_v32 = vsel %vm164_vm2, %v163_v18, %v158_v29 }
  0xc4   :  { %v104_v1 = vpop.xlane.xlu0 %103  ;;  %v199_v19 = vrot.slane %v107_v0, %v155_v8 }
  0xc5   :  { %v195_v20 = vrot.slane %v104_v1, %v150_v9 }
  0xc7   :  { %v101_v6 = vpop.xlane.xlu1 %100  ;;  %v200_v33 = vsel %vm157_vm1, %v199_v19, %v195_v20 }
  0xc8   :  { %v89_v7 = vpop.xlane.xlu0 %88  ;;  %v190_v21 = vrot.slane %v101_v6, %v169_v11 }
  0xc9   :  { %v170_v24 = vrot.slane %v89_v7, %v169_v11 }
  0xca   :  { %v191_v34 = vsel %vm171_vm3, %v190_v21, %v186_v30 }
  0xcb   :  { %v116_v12 = vpop.xlane.xlu1 %115  ;;  %v172_v36 = vsel %vm171_vm3, %v170_v24, %v165_v32 }
  0xcc   :  { %v110_v13 = vpop.xlane.xlu0 %109  ;;  %v214_v37 = vrot.slane %v116_v12, %v150_v9  ;;  %v231_v44 = vsel %vm230_vm4, %v191_v34, %v172_v36  ;;  %v379_v12 = vld [vmem:[%s585_s3] ss:$0 sm:$0xff] }
  0xcd   :  { %v204_v25 = vrot.slane %v110_v13, %v162_v10 }
  0xcf   :  { %v113_v22 = vpop.xlane.xlu1 %112  ;;  %v205_v38 = vsel %vm164_vm2, %v204_v25, %v200_v33 }
  0xd0   :  { %v119_v26 = vpop.xlane.xlu0 %118  ;;  %v209_v28 = vrot.slane %v113_v22, %v169_v11 }
  0xd1   :  { %v218_v31 = vrot.slane %v119_v26, %v155_v8 }
  0xd2   :  { %v210_v41 = vsel %vm171_vm3, %v209_v28, %v205_v38 }
  0xd3   :  { %v125_v35 = vpop.xlane.xlu1 %124  ;;  %v219_v43 = vsel %vm157_vm1, %v218_v31, %v214_v37  ;;  %v233_v47 = vsel %vm232_vm5, %v210_v41, %v231_v44 }
  0xd4   :  { %v122_v39 = vpop.xlane.xlu0 %121  ;;  %v228_v40 = vrot.slane %v125_v35, %v169_v11 }
  0xd5   :  { %v223_v42 = vrot.slane %v122_v39, %v162_v10  ;;  %v378_v10 = vld [vmem:[%s584_s2] ss:$0 sm:$0xff] }
  0xd7   :  { %v224_v45 = vsel %vm164_vm2, %v223_v42, %v219_v43 }
  0xd8   :  { %v229_v46 = vsel %vm171_vm3, %v228_v40, %v224_v45 }
  0xd9   :  { %v235_v48 = vsel %vm234_vm6, %v229_v46, %v233_v47 }
  0xda   :  { %394 = vmatmul.mubr.msk.f32.vlgmr.msra.gmra.mrb[0].mxu0 %vm236_vm7, %v235_v48 }
 0x1ad   :  { %v305_v49 = vpop.f32.mrb[0].mxu0 }
 0x1ae   :  { %311 = vst [vmem:[#allocation2] sm:$0xf] %v305_v49  ;;  %v395_v50 = vpop.f32.mrb[1].mxu0 }
 0x1b5   :  { %v316_v51 = vld [vmem:[#allocation2] sm:$0xf] }
 0x1b6   :  { %v320_v52 = vsel %vm319_vm8, %v316_v51, 0.0 }
 0x1b7   :  { %v322_v53 = vsel %vm321_vm9, %v320_v52, 0.0 }
 0x1b8   :  { %v323_v54 = vrot.slane %v322_v53, 4 }
 0x1ba   :  { %v324_v55 = vadd.f32 %v323_v54, %v322_v53 }
 0x1bc   :  { %v325_v56 = vrot.slane %v324_v55, 2 }
 0x1be   :  { %v326_v57 = vadd.f32 %v325_v56, %v324_v55 }
 0x1c0   :  { %v327_v58 = vrot.slane %v326_v57, 1 }
 0x1c2   :  { %v328_v59 = vadd.f32 %v327_v58, %v326_v57 }
 0x1c4   :  { %v329_v60 = vmul.f32 0.25, %v328_v59 }
 0x1c6   :  { %v330_v61 = vsub.f32 %v316_v51, %v329_v60 }
 0x1c8   :  { %v331_v62 = vsel %vm319_vm8, %v330_v61, 0.0 }
 0x1c9   :  { %v332_v63 = vmul.f32 %v331_v62, %v331_v62 }
 0x1cb   :  { %v333_v0 = vsel %vm321_vm9, %v332_v63, 0.0 }
 0x1cc   :  { %v334_v1 = vrot.slane %v333_v0, 4 }
 0x1ce   :  { %v335_v2 = vadd.f32 %v334_v1, %v333_v0 }
 0x1d0   :  { %v336_v4 = vrot.slane %v335_v2, 2 }
 0x1d2   :  { %v337_v5 = vadd.f32 %v336_v4, %v335_v2 }
 0x1d4   :  { %v338_v3 = vrot.slane %v337_v5, 1 }
 0x1d6   :  { %v339_v6 = vadd.f32 %v338_v3, %v337_v5 }
 0x1d8   :  { %v340_v7 = vmul.f32 0.25, %v339_v6 }
 0x1da   :  { %v341_v8 = vadd.f32 1e-05, %v340_v7 }
 0x1dc   :  { %412 = vrsqrt.f32 %v341_v8 }
 0x1e6   :  { %v413_v9 = vpop.eup %412 }
 0x1e7   :  { %v343_v11 = vmul.f32 %v413_v9, %v330_v61 }
 0x1e9   :  { %v351_v13 = vmul.f32 %v378_v10, %v343_v11 }
 0x1eb   :  { %v359_v14 = vadd.f32 %v379_v12, %v351_v13 }
 0x1ed   :  { %360 = vst [vmem:[#allocation8] sm:$0xf] %v359_v14 }
 0x1ee   :  { %469 = shalt.err (!%p466_p6)
}
 0x1ef   :  { %s470_s23 = scalar_lea.hbm %s586_s4, 64 }
 0x1f0   :  { %p471_p7 = scmp.ne.s32.totalorder %s586_s4, %s470_s23  ;;  %p474_p8 = scmp.lt.u32.totalorder %s470_s23, %s586_s4 }
 0x1f2   :  { %p476_p9 = pnand %p474_p8, %p471_p7 }
 0x1f4   :  { %479 = shalt.err (!%p476_p9)
}
 0x1f5   :  { %370 = dma.vmem_to_hbm [thread:$0]  %s368_s20, 64, %s586_s4, [#allocation5]  }
 0x1f6   :  { %484 = dma.done.wait [#allocation5], 64  }
 0x1f7   :  { %485 = vsyncadd [#allocation5], 4294967232 }
 0x1f8   :  { %374 = vsyncpa [#allocation4], 1 }
 0x1f9   :  { %375 = vsyncpa [#allocation7], 1 }
 0x1fa   :  { %376 = vsyncpa [#allocation5], 1 }

</bundles_post_ra>
